<compile_context>
chip_gen: v6e
topology: v6e:2x2x1
jax: 0.10.0
libtpu: 0.0.40
codegen_flags: <defaults>
</compile_context>

<pallas_src>
import functools

import jax
import jax.numpy as jnp
from jax.experimental import pallas as pl
from jax.experimental.pallas import tpu as pltpu


def _round_up(x, m):
    return (x + m - 1) // m * m


def _rnn_kernel(x_ref, wih_ref, whh_ref, b_ref, wlin_ref, blin_ref, out_ref,
                *, T, Bp):
    # x_ref:    [T*Bp, Ip]   time-major, batch-contiguous per timestep
    # wih_ref:  [Ip, Hp]     W_ih^T (zero padded)
    # whh_ref:  [Hp, Hp]     W_hh^T (zero padded)
    # b_ref:    [1, Hp]      b_ih + b_hh (zero padded)
    # wlin_ref: [Hp, Op]     W_lin^T (zero padded)
    # blin_ref: [1, Op]      b_lin (zero padded)
    # out_ref:  [Bp, Op]

    # Hoisted input projection + bias: one MXU matmul over the whole sequence
    # (no dependence on h, so it does not belong in the serial loop).
    xw = (jnp.dot(x_ref[...], wih_ref[...], preferred_element_type=jnp.float32)
          + b_ref[...])                                        # [T*Bp, Hp]

    whh = whh_ref[...]                                         # [Hp, Hp]

    # Serial Elman recurrence, statically unrolled (T is small and static).
    # h0 = 0 (PyTorch default), so step 0 is just tanh of the projected input.
    h = jnp.tanh(xw[0:Bp, :])                                  # [Bp, Hp]
    for t in range(1, T):
        h = jnp.tanh(xw[t * Bp:(t + 1) * Bp, :]
                     + jnp.dot(h, whh, preferred_element_type=jnp.float32))

    # Fused Linear head on the final hidden state.
    out_ref[...] = (
        jnp.dot(h, wlin_ref[...], preferred_element_type=jnp.float32)
        + blin_ref[...]
    ).astype(out_ref.dtype)


def rnn_model_forward(x, params):
    """x: [B, T, input_size] (batch_first=True). Returns [B, output_size]."""
    B, T, I = x.shape
    assert T >= 1, "RNN requires at least one timestep"
    H = params["w_hh"].shape[0]
    O = params["w_lin"].shape[0]

    # Hardware-tile padding: sublane dims -> multiple of 8, lane dims -> 128.
    Bp = _round_up(B, 8)
    Ip = _round_up(I, 8)
    Hp = _round_up(H, 128)
    Op = _round_up(O, 128)

    f32 = jnp.float32

    # Pad batch/input, then flatten to time-major [T*Bp, Ip] so each timestep is
    # a contiguous, sublane-aligned [Bp, :] slab inside the kernel.
    x_p = jnp.pad(x.astype(f32), ((0, Bp - B), (0, 0), (0, Ip - I)))
    x2d = jnp.transpose(x_p, (1, 0, 2)).reshape(T * Bp, Ip)

    # Pre-transpose + zero-pad weights so the kernel does plain row-major matmuls.
    wih = jnp.pad(params["w_ih"].T.astype(f32), ((0, Ip - I), (0, Hp - H)))
    whh = jnp.pad(params["w_hh"].T.astype(f32), ((0, Hp - H), (0, Hp - H)))
    b_rnn = jnp.pad((params["b_ih"] + params["b_hh"]).astype(f32),
                    (0, Hp - H)).reshape(1, Hp)
    wlin = jnp.pad(params["w_lin"].T.astype(f32), ((0, Hp - H), (0, Op - O)))
    blin = jnp.pad(params["b_lin"].astype(f32), (0, Op - O)).reshape(1, Op)

    kernel = functools.partial(_rnn_kernel, T=T, Bp=Bp)

    out_p = pl.pallas_call(
        kernel,
        out_shape=jax.ShapeDtypeStruct((Bp, Op), f32),
        in_specs=[pl.BlockSpec(memory_space=pltpu.MemorySpace.VMEM)] * 6,
        out_specs=pl.BlockSpec(memory_space=pltpu.MemorySpace.VMEM),
    )(x2d, wih, whh, b_rnn, wlin, blin)

    # Strip the tile padding.
    return out_p[:B, :O].astype(x.dtype)


def init_params(key, input_size=7, hidden_size=32, output_size=1):
    # PyTorch default init: U(-1/sqrt(H), 1/sqrt(H)) for both RNN and Linear.
    ks = jax.random.split(key, 6)
    k_rnn = 1.0 / jnp.sqrt(hidden_size)
    k_lin = 1.0 / jnp.sqrt(hidden_size)
    u = lambda k, shape, b: jax.random.uniform(k, shape, jnp.float32, -b, b)
    return {
        "w_ih": u(ks[0], (hidden_size, input_size), k_rnn),
        "w_hh": u(ks[1], (hidden_size, hidden_size), k_rnn),
        "b_ih": u(ks[2], (hidden_size,), k_rnn),
        "b_hh": u(ks[3], (hidden_size,), k_rnn),
        "w_lin": u(ks[4], (output_size, hidden_size), k_lin),
        "b_lin": u(ks[5], (output_size,), k_lin),
    }


def rnn_model_reference(x, params):
    """Pure-JAX reference matching PyTorch semantics."""
    B, T, I = x.shape
    H = params["w_hh"].shape[0]
    h = jnp.zeros((B, H), jnp.float32)
    for t in range(T):
        h = jnp.tanh(x[:, t, :] @ params["w_ih"].T + params["b_ih"]
                     + h @ params["w_hh"].T + params["b_hh"])
    return h @ params["w_lin"].T + params["b_lin"]


if __name__ == "__main__":
    key = jax.random.PRNGKey(0)
    k_param, k_x = jax.random.split(key)

    B, T, I, H, O = 2, 8, 7, 32, 1
    params = init_params(k_param, input_size=I, hidden_size=H, output_size=O)
    x = jax.random.normal(k_x, (B, T, I), jnp.float32)

    out = rnn_model_forward(x, params)
    out = jax.block_until_ready(out)

    ref = rnn_model_reference(x, params)
    assert out.shape == (B, O), (out.shape, (B, O))
    assert jnp.allclose(out, ref, atol=1e-5, rtol=1e-5), (out, ref)

    print("KERNEL_OK")
</pallas_src>

<mosaic_0001>
module attributes {stable_mosaic.version = 11 : i64} {
  func.func @_rnn_kernel(%arg0: memref<64x8xf32, #tpu.memory_space<vmem>>, %arg1: memref<8x128xf32, #tpu.memory_space<vmem>>, %arg2: memref<128x128xf32, #tpu.memory_space<vmem>>, %arg3: memref<1x128xf32, #tpu.memory_space<vmem>>, %arg4: memref<128x128xf32, #tpu.memory_space<vmem>>, %arg5: memref<1x128xf32, #tpu.memory_space<vmem>>, %arg6: memref<8x128xf32, #tpu.memory_space<vmem>>) attributes {dimension_semantics = [], scalar_prefetch = 0 : i64, scratch_operands = 0 : i64, tpu.core_type = #tpu.core_type<tc>} {
    %c0 = arith.constant 0 : index
    %c0_0 = arith.constant 0 : index
    %0 = vector.load %arg0[%c0, %c0_0] : memref<64x8xf32, #tpu.memory_space<vmem>>, vector<64x8xf32>
    %c0_1 = arith.constant 0 : index
    %c0_2 = arith.constant 0 : index
    %1 = vector.load %arg1[%c0_1, %c0_2] : memref<8x128xf32, #tpu.memory_space<vmem>>, vector<8x128xf32>
    %cst = arith.constant dense<0.000000e+00> : vector<64x128xf32>
    %2 = tpu.matmul %0, %1, %cst {dimension_numbers = #tpu.dot_dimension_numbers<[1], [0], [0], [1], [0, 0, 1, 1], [], []>} : vector<64x8xf32>, vector<8x128xf32>, vector<64x128xf32> -> vector<64x128xf32>
    %c0_3 = arith.constant 0 : index
    %c0_4 = arith.constant 0 : index
    %3 = vector.load %arg3[%c0_3, %c0_4] : memref<1x128xf32, #tpu.memory_space<vmem>>, vector<1x128xf32>
    %4 = vector.broadcast %3 : vector<1x128xf32> to vector<64x128xf32>
    %5 = arith.addf %2, %4 : vector<64x128xf32>
    %c0_5 = arith.constant 0 : index
    %c0_6 = arith.constant 0 : index
    %6 = vector.load %arg2[%c0_5, %c0_6] : memref<128x128xf32, #tpu.memory_space<vmem>>, vector<128x128xf32>
    %7 = vector.extract_strided_slice %5 {offsets = [0, 0], sizes = [8, 128], strides = [1, 1]} : vector<64x128xf32> to vector<8x128xf32>
    %8 = math.tanh %7 : vector<8x128xf32>
    %9 = vector.extract_strided_slice %5 {offsets = [8, 0], sizes = [8, 128], strides = [1, 1]} : vector<64x128xf32> to vector<8x128xf32>
    %cst_7 = arith.constant dense<0.000000e+00> : vector<8x128xf32>
    %10 = tpu.matmul %8, %6, %cst_7 {dimension_numbers = #tpu.dot_dimension_numbers<[1], [0], [0], [1], [0, 0, 1, 1], [], []>} : vector<8x128xf32>, vector<128x128xf32>, vector<8x128xf32> -> vector<8x128xf32>
    %11 = arith.addf %9, %10 : vector<8x128xf32>
    %12 = math.tanh %11 : vector<8x128xf32>
    %13 = vector.extract_strided_slice %5 {offsets = [16, 0], sizes = [8, 128], strides = [1, 1]} : vector<64x128xf32> to vector<8x128xf32>
    %cst_8 = arith.constant dense<0.000000e+00> : vector<8x128xf32>
    %14 = tpu.matmul %12, %6, %cst_8 {dimension_numbers = #tpu.dot_dimension_numbers<[1], [0], [0], [1], [0, 0, 1, 1], [], []>} : vector<8x128xf32>, vector<128x128xf32>, vector<8x128xf32> -> vector<8x128xf32>
    %15 = arith.addf %13, %14 : vector<8x128xf32>
    %16 = math.tanh %15 : vector<8x128xf32>
    %17 = vector.extract_strided_slice %5 {offsets = [24, 0], sizes = [8, 128], strides = [1, 1]} : vector<64x128xf32> to vector<8x128xf32>
    %cst_9 = arith.constant dense<0.000000e+00> : vector<8x128xf32>
    %18 = tpu.matmul %16, %6, %cst_9 {dimension_numbers = #tpu.dot_dimension_numbers<[1], [0], [0], [1], [0, 0, 1, 1], [], []>} : vector<8x128xf32>, vector<128x128xf32>, vector<8x128xf32> -> vector<8x128xf32>
    %19 = arith.addf %17, %18 : vector<8x128xf32>
    %20 = math.tanh %19 : vector<8x128xf32>
    %21 = vector.extract_strided_slice %5 {offsets = [32, 0], sizes = [8, 128], strides = [1, 1]} : vector<64x128xf32> to vector<8x128xf32>
    %cst_10 = arith.constant dense<0.000000e+00> : vector<8x128xf32>
    %22 = tpu.matmul %20, %6, %cst_10 {dimension_numbers = #tpu.dot_dimension_numbers<[1], [0], [0], [1], [0, 0, 1, 1], [], []>} : vector<8x128xf32>, vector<128x128xf32>, vector<8x128xf32> -> vector<8x128xf32>
    %23 = arith.addf %21, %22 : vector<8x128xf32>
    %24 = math.tanh %23 : vector<8x128xf32>
    %25 = vector.extract_strided_slice %5 {offsets = [40, 0], sizes = [8, 128], strides = [1, 1]} : vector<64x128xf32> to vector<8x128xf32>
    %cst_11 = arith.constant dense<0.000000e+00> : vector<8x128xf32>
    %26 = tpu.matmul %24, %6, %cst_11 {dimension_numbers = #tpu.dot_dimension_numbers<[1], [0], [0], [1], [0, 0, 1, 1], [], []>} : vector<8x128xf32>, vector<128x128xf32>, vector<8x128xf32> -> vector<8x128xf32>
    %27 = arith.addf %25, %26 : vector<8x128xf32>
    %28 = math.tanh %27 : vector<8x128xf32>
    %29 = vector.extract_strided_slice %5 {offsets = [48, 0], sizes = [8, 128], strides = [1, 1]} : vector<64x128xf32> to vector<8x128xf32>
    %cst_12 = arith.constant dense<0.000000e+00> : vector<8x128xf32>
    %30 = tpu.matmul %28, %6, %cst_12 {dimension_numbers = #tpu.dot_dimension_numbers<[1], [0], [0], [1], [0, 0, 1, 1], [], []>} : vector<8x128xf32>, vector<128x128xf32>, vector<8x128xf32> -> vector<8x128xf32>
    %31 = arith.addf %29, %30 : vector<8x128xf32>
    %32 = math.tanh %31 : vector<8x128xf32>
    %33 = vector.extract_strided_slice %5 {offsets = [56, 0], sizes = [8, 128], strides = [1, 1]} : vector<64x128xf32> to vector<8x128xf32>
    %cst_13 = arith.constant dense<0.000000e+00> : vector<8x128xf32>
    %34 = tpu.matmul %32, %6, %cst_13 {dimension_numbers = #tpu.dot_dimension_numbers<[1], [0], [0], [1], [0, 0, 1, 1], [], []>} : vector<8x128xf32>, vector<128x128xf32>, vector<8x128xf32> -> vector<8x128xf32>
    %35 = arith.addf %33, %34 : vector<8x128xf32>
    %36 = math.tanh %35 : vector<8x128xf32>
    %c0_14 = arith.constant 0 : index
    %c0_15 = arith.constant 0 : index
    %37 = vector.load %arg4[%c0_14, %c0_15] : memref<128x128xf32, #tpu.memory_space<vmem>>, vector<128x128xf32>
    %cst_16 = arith.constant dense<0.000000e+00> : vector<8x128xf32>
    %38 = tpu.matmul %36, %37, %cst_16 {dimension_numbers = #tpu.dot_dimension_numbers<[1], [0], [0], [1], [0, 0, 1, 1], [], []>} : vector<8x128xf32>, vector<128x128xf32>, vector<8x128xf32> -> vector<8x128xf32>
    %c0_17 = arith.constant 0 : index
    %c0_18 = arith.constant 0 : index
    %39 = vector.load %arg5[%c0_17, %c0_18] : memref<1x128xf32, #tpu.memory_space<vmem>>, vector<1x128xf32>
    %40 = vector.broadcast %39 : vector<1x128xf32> to vector<8x128xf32>
    %41 = arith.addf %38, %40 : vector<8x128xf32>
    %c0_19 = arith.constant 0 : index
    %c0_20 = arith.constant 0 : index
    %42 = vector.load %arg6[%c0_19, %c0_20] : memref<8x128xf32, #tpu.memory_space<vmem>>, vector<8x128xf32>
    tpu.vector_store %arg6[%c0_19, %c0_20], %41 {strides = array<i32>} : memref<8x128xf32, #tpu.memory_space<vmem>>, vector<8x128xf32>,
    return
  }
}

</mosaic_0001>

<bundles_post_ra>
// kernel: tpu_custom_call.1
= control target key start
LH: loop header
LB: loop body
LE: loop exit
PB: predicated region body
PF: predicated region fallthrough
CT: control target
= control target key end

     0   :  { %11 = vsyncpa [#allocation3], 0  ;;  %s1769_s0 = inlined_call_operand.vmem [shape: f32[64,8], index: 0, kind: input, shape index: {}]   ;;  %s1770_s1 = inlined_call_operand.vmem [shape: f32[8,128], index: 1, kind: input, shape index: {}]   ;;  %s1771_s2 = inlined_call_operand.hbm [shape: f32[128,128], index: 2, kind: input, shape index: {}]   ;;  %s1772_s3 = inlined_call_operand.vmem [shape: f32[1,128], index: 3, kind: input, shape index: {}]   ;;  %s1773_s4 = inlined_call_operand.hbm [shape: f32[128,128], index: 4, kind: input, shape index: {}]   ;;  %s1774_s5 = inlined_call_operand.vmem [shape: f32[1,128], index: 5, kind: input, shape index: {}]   ;;  %s1775_s6 = inlined_call_operand.hbm [shape: f32[8,128], index: 6, kind: output, shape index: {}]  }
   0x1   :  { %12 = vsyncpa [#allocation6], 0 }
   0x2   :  { %13 = vsyncpa [#allocation4], 0  ;;  %s1367_s21 = smov [#allocation2]  }
   0x3   :  { %s23_s22 = sshll.u32 %s1367_s21, 4  ;;  %s24_s22 = int_to_ptr.vmem [resolvable:$true] %s23_s22 }
   0x4   :  { %s1309_s23 = scalar_lea.vmem %s24_s22, 2048  ;;  %p1314_p1 = scmp.lt.s32.totalorder %s24_s22, %s24_s22 }
   0x5   :  { %p1310_p0 = scmp.ne.s32.totalorder %s24_s22, %s1309_s23  ;;  %p1315_p2 = scmp.lt.s32.totalorder %s1309_s23, %s1309_s23 }
   0x7   :  { %p1316_p3 = por %p1315_p2, %p1314_p1 }
   0x9   :  { %p1317_p4 = pnand %p1316_p3, %p1310_p0 }
   0xb   :  { %1320 = shalt.err (!%p1317_p4)
}
   0xc   :  { %s1368_s24 = smov 128   ;;  %s1369_s25 = smov 8  }
   0xd   :  { %29 = dma.hbm_to_vmem [thread:$0]  %s1771_s2, 2048, %s24_s22, [#allocation3], %s1368_s24, %s1368_s24, %s1369_s25  }
   0xe   :  { %s1370_s28 = smov [#allocation5]  }
   0xf   :  { %s37_s29 = sshll.u32 %s1370_s28, 4  ;;  %s38_s29 = int_to_ptr.vmem [resolvable:$true] %s37_s29 }
  0x10   :  { %s1329_s30 = scalar_lea.vmem %s38_s29, 2048  ;;  %p1334_p6 = scmp.lt.s32.totalorder %s38_s29, %s38_s29 }
  0x11   :  { %p1330_p5 = scmp.ne.s32.totalorder %s38_s29, %s1329_s30  ;;  %p1335_p7 = scmp.lt.s32.totalorder %s1329_s30, %s1329_s30 }
  0x13   :  { %p1336_p8 = por %p1335_p7, %p1334_p6 }
  0x15   :  { %p1337_p9 = pnand %p1336_p8, %p1330_p5 }
  0x17   :  { %1340 = shalt.err (!%p1337_p9)
}
  0x18   :  { %43 = dma.hbm_to_vmem [thread:$0]  %s1773_s4, 2048, %s38_s29, [#allocation6], %s1368_s24, %s1368_s24, %s1369_s25  }
  0x19   :  { %1361 = dma.done.wait [#allocation3], 2048  }
  0x1a   :  { %1362 = vsyncadd [#allocation3], 4294965248 }
  0x1b   :  { %1363 = dma.done.wait [#allocation6], 2048  }
  0x1c   :  { %1364 = vsyncadd [#allocation6], 4294965248  ;;  %v1371_v0 = vmov 0.0   ;;  %vm68_vm0 = vcmask 64512   ;;  %v60_v1 = vld [vmem:[%s1770_s1] sm:$0xff]  ;;  %v53_v3 = vld [vmem:[%s1769_s0 + $0x8] sm:$0xff] }
  0x1d   :  { %998 = vmatprep.subr.mxu1 %v1371_v0  ;;  %v52_v2 = vld [vmem:[%s1769_s0] sm:$0xff]  ;;  %984 = vmatprep.subr.mxu0 %v60_v1  ;;  %v1426_v4 = vld [vmem:[#allocation2 + $0x78] sm:$0xff]  ;;  %v1428_v5 = vld [vmem:[#allocation2 + $0x70] sm:$0xff]  ;;  %vm1372_vm1 = vmmov 0   ;;  %s1373_s26 = smov [#allocation7]  }
  0x1e   :  { %986 = vmatprep.mubr.msk.f32.mxu0 %vm68_vm0, %v52_v2  ;;  %985 = vmatpush3.msra.mxu0 %v60_v1  ;;  %v1433_v6 = vld [vmem:[#allocation2 + $0x68] sm:$0xff]  ;;  %v1438_v7 = vld [vmem:[#allocation2 + $0x60] sm:$0xff]  ;;  %v1444_v8 = vld [vmem:[#allocation2 + $0x58] sm:$0xff]  ;;  %s819_s27 = sshll.u32 %s1373_s26, 4  ;;  %s820_s27 = int_to_ptr.vmem [resolvable:$true] %s819_s27 }
  0x1f   :  { %999 = vmatpush3.msra.mxu1 %v1426_v4  ;;  %987 = vmatmul.mubr.msk.f32.vlgmr.msra.gmra.mxu0 %vm68_vm0, %v53_v3  ;;  %v1450_v9 = vld [vmem:[#allocation2 + $0x50] sm:$0xff]  ;;  %v1464_v10 = vld [vmem:[#allocation2 + $0x48] sm:$0xff]  ;;  %v1469_v11 = vld [vmem:[#allocation2 + $0x40] sm:$0xff]  ;;  %s1341_s28 = scalar_lea.vmem %s820_s27, 128  ;;  %p1346_p11 = scmp.lt.s32.totalorder %s820_s27, %s820_s27 }
  0x20   :  { %1000 = vmatprep.subr.mxu1 %v1371_v0  ;;  %1033 = vmatprep.subr.mxu0 %v1371_v0  ;;  %v1475_v12 = vld [vmem:[#allocation2 + $0x38] sm:$0xff]  ;;  %v1481_v13 = vld [vmem:[#allocation2 + $0x30] sm:$0xff]  ;;  %v1483_v14 = vld [vmem:[#allocation2 + $0x28] sm:$0xff]  ;;  %p1342_p10 = scmp.ne.s32.totalorder %s820_s27, %s1341_s28  ;;  %p1347_p12 = scmp.lt.s32.totalorder %s1341_s28, %s1341_s28 }
  0x21   :  { %1001 = vmatpush3.msra.mxu1 %v1428_v5  ;;  %1034 = vmatpush3.msra.mxu0 %v1426_v4  ;;  %v1490_v15 = vld [vmem:[#allocation2 + $0x20] sm:$0xff]  ;;  %v1496_v16 = vld [vmem:[#allocation2 + $0x18] sm:$0xff]  ;;  %v1502_v17 = vld [vmem:[#allocation2 + $0x10] sm:$0xff] }
  0x22   :  { %1002 = vmatprep.subr.mxu1 %v1371_v0  ;;  %1035 = vmatprep.subr.mxu0 %v1371_v0  ;;  %v1508_v18 = vld [vmem:[#allocation2 + $0x8] sm:$0xff]  ;;  %v1514_v19 = vld [vmem:[#allocation2] sm:$0xff]  ;;  %v54_v25 = vld [vmem:[%s1769_s0 + $0x10] sm:$0xff]  ;;  %p1348_p13 = por %p1347_p12, %p1346_p11 }
  0x23   :  { %1003 = vmatpush3.msra.mxu1 %v1433_v6  ;;  %1036 = vmatpush3.msra.mxu0 %v1428_v5  ;;  %v1529_v21 = vld [vmem:[%s1772_s3] ss:$0 sm:$0xff]  ;;  %v55_v26 = vld [vmem:[%s1769_s0 + $0x18] sm:$0xff]  ;;  %v57_v28 = vld [vmem:[%s1769_s0 + $0x28] sm:$0xff] }
  0x24   :  { %1004 = vmatprep.subr.mxu1 %v1371_v0  ;;  %1037 = vmatprep.subr.mxu0 %v1371_v0  ;;  %v56_v27 = vld [vmem:[%s1769_s0 + $0x20] sm:$0xff]  ;;  %v58_v29 = vld [vmem:[%s1769_s0 + $0x30] sm:$0xff]  ;;  %v59_v30 = vld [vmem:[%s1769_s0 + $0x38] sm:$0xff]  ;;  %p1349_p0 = pnand %p1348_p13, %p1342_p10 }
  0x25   :  { %1005 = vmatpush3.msra.mxu1 %v1438_v7  ;;  %1038 = vmatpush3.msra.mxu0 %v1433_v6  ;;  %v734_v62 = vld [vmem:[#allocation5 + $0x78] sm:$0xff]  ;;  %v733_v63 = vld [vmem:[#allocation5 + $0x70] sm:$0xff]  ;;  %v732_v1 = vld [vmem:[#allocation5 + $0x68] sm:$0xff] }
  0x26   :  { %1006 = vmatprep.subr.mxu1 %v1371_v0  ;;  %1039 = vmatprep.subr.mxu0 %v1371_v0  ;;  %v731_v2 = vld [vmem:[#allocation5 + $0x60] sm:$0xff]  ;;  %v730_v3 = vld [vmem:[#allocation5 + $0x58] sm:$0xff] }
  0x27   :  { %1007 = vmatpush3.msra.mxu1 %v1444_v8  ;;  %1040 = vmatpush3.msra.mxu0 %v1438_v7 }
  0x28   :  { %1008 = vmatprep.subr.mxu1 %v1371_v0  ;;  %1041 = vmatprep.subr.mxu0 %v1371_v0 }
  0x29   :  { %1009 = vmatpush3.msra.mxu1 %v1450_v9  ;;  %1042 = vmatpush3.msra.mxu0 %v1444_v8 }
  0x2a   :  { %1010 = vmatprep.subr.mxu1 %v1371_v0  ;;  %1043 = vmatprep.subr.mxu0 %v1371_v0 }
  0x2b   :  { %1044 = vmatpush3.msra.mxu0 %v1450_v9  ;;  %1011 = vmatpush3.msra.mxu1 %v1464_v10 }
  0x2c   :  { %1045 = vmatprep.subr.mxu0 %v1371_v0  ;;  %1012 = vmatprep.subr.mxu1 %v1371_v0 }
  0x2d   :  { %1046 = vmatpush3.msra.mxu0 %v1464_v10  ;;  %1013 = vmatpush3.msra.mxu1 %v1469_v11 }
  0x2e   :  { %1047 = vmatprep.subr.mxu0 %v1371_v0  ;;  %1014 = vmatprep.subr.mxu1 %v1371_v0 }
  0x2f   :  { %1048 = vmatpush3.msra.mxu0 %v1469_v11  ;;  %1015 = vmatpush3.msra.mxu1 %v1475_v12 }
  0x30   :  { %1049 = vmatprep.subr.mxu0 %v1371_v0  ;;  %1016 = vmatprep.subr.mxu1 %v1371_v0 }
  0x31   :  { %1050 = vmatpush3.msra.mxu0 %v1475_v12  ;;  %1017 = vmatpush3.msra.mxu1 %v1481_v13 }
  0x32   :  { %1051 = vmatprep.subr.mxu0 %v1371_v0  ;;  %1030 = vmatprep.mubr.msk.f32.mxu1 %vm1372_vm1, %v1371_v0 }
  0x33   :  { %1018 = vmatprep.subr.mxu1 %v1371_v0  ;;  %1052 = vmatpush3.msra.mxu0 %v1481_v13 }
  0x34   :  { %1019 = vmatpush3.msra.mxu1 %v1483_v14  ;;  %1053 = vmatprep.subr.mxu0 %v1371_v0 }
  0x35   :  { %1020 = vmatprep.subr.mxu1 %v1371_v0  ;;  %1054 = vmatpush3.msra.mxu0 %v1483_v14 }
  0x36   :  { %1021 = vmatpush3.msra.mxu1 %v1490_v15  ;;  %1055 = vmatprep.subr.mxu0 %v1371_v0 }
  0x37   :  { %1022 = vmatprep.subr.mxu1 %v1371_v0  ;;  %1056 = vmatpush3.msra.mxu0 %v1490_v15 }
  0x38   :  { %1023 = vmatpush3.msra.mxu1 %v1496_v16  ;;  %1057 = vmatprep.subr.mxu0 %v1371_v0 }
  0x39   :  { %1024 = vmatprep.subr.mxu1 %v1371_v0  ;;  %1058 = vmatpush3.msra.mxu0 %v1496_v16 }
  0x3a   :  { %1025 = vmatpush3.msra.mxu1 %v1502_v17  ;;  %1059 = vmatprep.subr.mxu0 %v1371_v0 }
  0x3b   :  { %1026 = vmatprep.subr.mxu1 %v1371_v0  ;;  %1060 = vmatpush3.msra.mxu0 %v1502_v17 }
  0x3c   :  { %1027 = vmatpush3.msra.mxu1 %v1508_v18  ;;  %1061 = vmatprep.subr.mxu0 %v1371_v0 }
  0x3d   :  { %1028 = vmatprep.subr.mxu1 %v1371_v0  ;;  %1062 = vmatpush3.msra.mxu0 %v1508_v18 }
  0x3e   :  { %1029 = vmatpush3.msra.mxu1 %v1514_v19  ;;  %1063 = vmatprep.subr.mxu0 %v1371_v0 }
  0x3f   :  { %1064 = vmatpush3.msra.mxu0 %v1514_v19  ;;  %1068 = vmatprep.subr.mxu1 %v1371_v0 }
  0x40   :  { %1103 = vmatprep.subr.mxu0 %v1371_v0  ;;  %989 = vmatprep.mubr.msk.f32.mxu0 %vm68_vm0, %v54_v25 }
  0x41   :  { %990 = vmatmul.mubr.msk.f32.gmra.mxu0 %vm68_vm0, %v55_v26  ;;  %v838_v26 = vld [vmem:[%s1774_s5] ss:$0 sm:$0xff] }
  0x42   :  { %992 = vmatprep.mubr.msk.f32.mxu0 %vm68_vm0, %v56_v27 }
  0x45   :  { %993 = vmatmul.mubr.msk.f32.gmra.mxu0 %vm68_vm0, %v57_v28 }
  0x46   :  { %995 = vmatprep.mubr.msk.f32.mxu0 %vm68_vm0, %v58_v29 }
  0x49   :  { %996 = vmatmul.mubr.msk.f32.gmra.mxu0 %vm68_vm0, %v59_v30 }
  0x4a   :  { %1065 = vmatprep.mubr.msk.f32.mxu0 %vm1372_vm1, %v1371_v0 }
  0xdf   :  { %v988_v20 = vpop.f32.mrf.mxu0 }
  0xe0   :  { %v165_v31 = vadd.f32 %v988_v20, %v1529_v21 }
  0xe1   :  { %v159_v22 = vpop.f32.mrf.mxu0 }
  0xe2   :  { %v160_v23 = vadd.f32 %v1529_v21, %v159_v22 }
  0xe4   :  { %1285 = vtanh.f32 %v160_v23 }
  0xf1   :  { %v1286_v24 = vpop.eup %1285 }
  0xf2   :  { %1031 = vmatmul.mubr.f32.vlgmr.msra.gmra.mxu1 %v1286_v24 }
  0xf3   :  { %1069 = vmatpush3.msra.mxu1 %v1426_v4  ;;  %1100 = vmatprep.mubr.msk.f32.mxu1 %vm1372_vm1, %v1371_v0 }
  0xf4   :  { %1070 = vmatprep.subr.mxu1 %v1371_v0 }
  0xf5   :  { %1071 = vmatpush3.msra.mxu1 %v1428_v5 }
  0xf6   :  { %1072 = vmatprep.subr.mxu1 %v1371_v0 }
  0xf7   :  { %1073 = vmatpush3.msra.mxu1 %v1433_v6 }
  0xf8   :  { %1074 = vmatprep.subr.mxu1 %v1371_v0 }
  0xf9   :  { %1075 = vmatpush3.msra.mxu1 %v1438_v7 }
  0xfa   :  { %1076 = vmatprep.subr.mxu1 %v1371_v0 }
  0xfb   :  { %1077 = vmatpush3.msra.mxu1 %v1444_v8 }
  0xfc   :  { %1078 = vmatprep.subr.mxu1 %v1371_v0 }
  0xfd   :  { %1079 = vmatpush3.msra.mxu1 %v1450_v9 }
  0xfe   :  { %1080 = vmatprep.subr.mxu1 %v1371_v0 }
  0xff   :  { %1081 = vmatpush3.msra.mxu1 %v1464_v10 }
 0x100   :  { %1082 = vmatprep.subr.mxu1 %v1371_v0 }
 0x101   :  { %1083 = vmatpush3.msra.mxu1 %v1469_v11  ;;  %v991_v36 = vpop.f32.mrf.mxu0 }
 0x102   :  { %1084 = vmatprep.subr.mxu1 %v1371_v0  ;;  %v175_v47 = vadd.f32 %v991_v36, %v1529_v21 }
 0x103   :  { %1085 = vmatpush3.msra.mxu1 %v1475_v12  ;;  %v169_v37 = vpop.f32.mrf.mxu0 }
 0x104   :  { %1086 = vmatprep.subr.mxu1 %v1371_v0  ;;  %v170_v42 = vadd.f32 %v1529_v21, %v169_v37 }
 0x105   :  { %1087 = vmatpush3.msra.mxu1 %v1481_v13  ;;  %v1627_v38 = vpop.f32.mrf.mxu0 }
 0x106   :  { %1088 = vmatprep.subr.mxu1 %v1371_v0  ;;  %v185_v57 = vadd.f32 %v1627_v38, %v1529_v21 }
 0x107   :  { %1089 = vmatpush3.msra.mxu1 %v1483_v14  ;;  %v1629_v39 = vpop.f32.mrf.mxu0 }
 0x108   :  { %1090 = vmatprep.subr.mxu1 %v1371_v0  ;;  %v180_v52 = vadd.f32 %v1529_v21, %v1629_v39 }
 0x109   :  { %1091 = vmatpush3.msra.mxu1 %v1490_v15  ;;  %v1631_v40 = vpop.f32.mrf.mxu0 }
 0x10a   :  { %1092 = vmatprep.subr.mxu1 %v1371_v0  ;;  %v195_v20 = vadd.f32 %v1631_v40, %v1529_v21 }
 0x10b   :  { %1093 = vmatpush3.msra.mxu1 %v1496_v16  ;;  %v1633_v41 = vpop.f32.mrf.mxu0 }
 0x10c   :  { %1094 = vmatprep.subr.mxu1 %v1371_v0 }
 0x10d   :  { %1095 = vmatpush3.msra.mxu1 %v1502_v17 }
 0x10e   :  { %1096 = vmatprep.subr.mxu1 %v1371_v0 }
 0x10f   :  { %1097 = vmatpush3.msra.mxu1 %v1508_v18 }
 0x110   :  { %1098 = vmatprep.subr.mxu1 %v1371_v0 }
 0x111   :  { %1099 = vmatpush3.msra.mxu1 %v1514_v19 }
 0x112   :  { %1138 = vmatprep.subr.mxu1 %v1371_v0 }
 0x1b2   :  { %v281_v32 = vpop.f32.mrf.mxu1 }
 0x1b3   :  { %v285_v33 = vadd.f32 %v281_v32, %v165_v31 }
 0x1b4   :  { %v1032_v34 = vpop.f32.mrf.mxu1 }
 0x1b5   :  { %1287 = vtanh.f32 %v285_v33 }
 0x1c2   :  { %v1288_v35 = vpop.eup %1287 }
 0x1c3   :  { %1066 = vmatmul.mubr.f32.vlgmr.msra.gmra.mxu0 %v1288_v35 }
 0x1c4   :  { %1104 = vmatpush3.msra.mxu0 %v1426_v4  ;;  %1135 = vmatprep.mubr.msk.f32.mxu0 %vm1372_vm1, %v1371_v0 }
 0x1c5   :  { %1105 = vmatprep.subr.mxu0 %v1371_v0 }
 0x1c6   :  { %1106 = vmatpush3.msra.mxu0 %v1428_v5 }
 0x1c7   :  { %1107 = vmatprep.subr.mxu0 %v1371_v0 }
 0x1c8   :  { %1108 = vmatpush3.msra.mxu0 %v1433_v6 }
 0x1c9   :  { %1109 = vmatprep.subr.mxu0 %v1371_v0 }
 0x1ca   :  { %1110 = vmatpush3.msra.mxu0 %v1438_v7 }
 0x1cb   :  { %1111 = vmatprep.subr.mxu0 %v1371_v0 }
 0x1cc   :  { %1112 = vmatpush3.msra.mxu0 %v1444_v8 }
 0x1cd   :  { %1113 = vmatprep.subr.mxu0 %v1371_v0 }
 0x1ce   :  { %1114 = vmatpush3.msra.mxu0 %v1450_v9 }
 0x1cf   :  { %1115 = vmatprep.subr.mxu0 %v1371_v0 }
 0x1d0   :  { %1116 = vmatpush3.msra.mxu0 %v1464_v10 }
 0x1d1   :  { %1117 = vmatprep.subr.mxu0 %v1371_v0 }
 0x1d2   :  { %1118 = vmatpush3.msra.mxu0 %v1469_v11 }
 0x1d3   :  { %1119 = vmatprep.subr.mxu0 %v1371_v0 }
 0x1d4   :  { %1120 = vmatpush3.msra.mxu0 %v1475_v12 }
 0x1d5   :  { %1121 = vmatprep.subr.mxu0 %v1371_v0 }
 0x1d6   :  { %1122 = vmatpush3.msra.mxu0 %v1481_v13 }
 0x1d7   :  { %1123 = vmatprep.subr.mxu0 %v1371_v0 }
 0x1d8   :  { %1124 = vmatpush3.msra.mxu0 %v1483_v14 }
 0x1d9   :  { %1125 = vmatprep.subr.mxu0 %v1371_v0 }
 0x1da   :  { %1126 = vmatpush3.msra.mxu0 %v1490_v15 }
 0x1db   :  { %1127 = vmatprep.subr.mxu0 %v1371_v0 }
 0x1dc   :  { %1128 = vmatpush3.msra.mxu0 %v1496_v16 }
 0x1dd   :  { %1129 = vmatprep.subr.mxu0 %v1371_v0 }
 0x1de   :  { %1130 = vmatpush3.msra.mxu0 %v1502_v17 }
 0x1df   :  { %1131 = vmatprep.subr.mxu0 %v1371_v0 }
 0x1e0   :  { %1132 = vmatpush3.msra.mxu0 %v1508_v18 }
 0x1e1   :  { %1133 = vmatprep.subr.mxu0 %v1371_v0 }
 0x1e2   :  { %1134 = vmatpush3.msra.mxu0 %v1514_v19 }
 0x1e3   :  { %1173 = vmatprep.subr.mxu0 %v1371_v0 }
 0x283   :  { %v353_v43 = vpop.f32.mrf.mxu0 }
 0x284   :  { %v357_v44 = vadd.f32 %v353_v43, %v170_v42 }
 0x285   :  { %v1067_v45 = vpop.f32.mrf.mxu0 }
 0x286   :  { %1289 = vtanh.f32 %v357_v44 }
 0x293   :  { %v1290_v46 = vpop.eup %1289 }
 0x294   :  { %1101 = vmatmul.mubr.f32.vlgmr.msra.gmra.mxu1 %v1290_v46 }
 0x295   :  { %1139 = vmatpush3.msra.mxu1 %v1426_v4  ;;  %1170 = vmatprep.mubr.msk.f32.mxu1 %vm1372_vm1, %v1371_v0 }
 0x296   :  { %1140 = vmatprep.subr.mxu1 %v1371_v0 }
 0x297   :  { %1141 = vmatpush3.msra.mxu1 %v1428_v5 }
 0x298   :  { %1142 = vmatprep.subr.mxu1 %v1371_v0 }
 0x299   :  { %1143 = vmatpush3.msra.mxu1 %v1433_v6 }
 0x29a   :  { %1144 = vmatprep.subr.mxu1 %v1371_v0 }
 0x29b   :  { %1145 = vmatpush3.msra.mxu1 %v1438_v7 }
 0x29c   :  { %1146 = vmatprep.subr.mxu1 %v1371_v0 }
 0x29d   :  { %1147 = vmatpush3.msra.mxu1 %v1444_v8 }
 0x29e   :  { %1148 = vmatprep.subr.mxu1 %v1371_v0 }
 0x29f   :  { %1149 = vmatpush3.msra.mxu1 %v1450_v9 }
 0x2a0   :  { %1150 = vmatprep.subr.mxu1 %v1371_v0 }
 0x2a1   :  { %1151 = vmatpush3.msra.mxu1 %v1464_v10 }
 0x2a2   :  { %1152 = vmatprep.subr.mxu1 %v1371_v0 }
 0x2a3   :  { %1153 = vmatpush3.msra.mxu1 %v1469_v11 }
 0x2a4   :  { %1154 = vmatprep.subr.mxu1 %v1371_v0 }
 0x2a5   :  { %1155 = vmatpush3.msra.mxu1 %v1475_v12 }
 0x2a6   :  { %1156 = vmatprep.subr.mxu1 %v1371_v0 }
 0x2a7   :  { %1157 = vmatpush3.msra.mxu1 %v1481_v13 }
 0x2a8   :  { %1158 = vmatprep.subr.mxu1 %v1371_v0 }
 0x2a9   :  { %1159 = vmatpush3.msra.mxu1 %v1483_v14 }
 0x2aa   :  { %1160 = vmatprep.subr.mxu1 %v1371_v0 }
 0x2ab   :  { %1161 = vmatpush3.msra.mxu1 %v1490_v15 }
 0x2ac   :  { %1162 = vmatprep.subr.mxu1 %v1371_v0 }
 0x2ad   :  { %1163 = vmatpush3.msra.mxu1 %v1496_v16 }
 0x2ae   :  { %1164 = vmatprep.subr.mxu1 %v1371_v0 }
 0x2af   :  { %1165 = vmatpush3.msra.mxu1 %v1502_v17 }
 0x2b0   :  { %1166 = vmatprep.subr.mxu1 %v1371_v0 }
 0x2b1   :  { %1167 = vmatpush3.msra.mxu1 %v1508_v18 }
 0x2b2   :  { %1168 = vmatprep.subr.mxu1 %v1371_v0 }
 0x2b3   :  { %1169 = vmatpush3.msra.mxu1 %v1514_v19 }
 0x2b4   :  { %1208 = vmatprep.subr.mxu1 %v1371_v0 }
 0x354   :  { %v425_v48 = vpop.f32.mrf.mxu1 }
 0x355   :  { %v429_v49 = vadd.f32 %v425_v48, %v175_v47 }
 0x356   :  { %v1102_v50 = vpop.f32.mrf.mxu1 }
 0x357   :  { %1291 = vtanh.f32 %v429_v49 }
 0x364   :  { %v1292_v51 = vpop.eup %1291 }
 0x365   :  { %1136 = vmatmul.mubr.f32.vlgmr.msra.gmra.mxu0 %v1292_v51 }
 0x366   :  { %1174 = vmatpush3.msra.mxu0 %v1426_v4  ;;  %1205 = vmatprep.mubr.msk.f32.mxu0 %vm1372_vm1, %v1371_v0 }
 0x367   :  { %1175 = vmatprep.subr.mxu0 %v1371_v0 }
 0x368   :  { %1176 = vmatpush3.msra.mxu0 %v1428_v5 }
 0x369   :  { %1177 = vmatprep.subr.mxu0 %v1371_v0 }
 0x36a   :  { %1178 = vmatpush3.msra.mxu0 %v1433_v6 }
 0x36b   :  { %1179 = vmatprep.subr.mxu0 %v1371_v0 }
 0x36c   :  { %1180 = vmatpush3.msra.mxu0 %v1438_v7 }
 0x36d   :  { %1181 = vmatprep.subr.mxu0 %v1371_v0 }
 0x36e   :  { %1182 = vmatpush3.msra.mxu0 %v1444_v8 }
 0x36f   :  { %1183 = vmatprep.subr.mxu0 %v1371_v0 }
 0x370   :  { %1184 = vmatpush3.msra.mxu0 %v1450_v9 }
 0x371   :  { %1185 = vmatprep.subr.mxu0 %v1371_v0 }
 0x372   :  { %1186 = vmatpush3.msra.mxu0 %v1464_v10 }
 0x373   :  { %1187 = vmatprep.subr.mxu0 %v1371_v0 }
 0x374   :  { %1188 = vmatpush3.msra.mxu0 %v1469_v11 }
 0x375   :  { %1189 = vmatprep.subr.mxu0 %v1371_v0 }
 0x376   :  { %1190 = vmatpush3.msra.mxu0 %v1475_v12 }
 0x377   :  { %1191 = vmatprep.subr.mxu0 %v1371_v0 }
 0x378   :  { %1192 = vmatpush3.msra.mxu0 %v1481_v13 }
 0x379   :  { %1193 = vmatprep.subr.mxu0 %v1371_v0 }
 0x37a   :  { %1194 = vmatpush3.msra.mxu0 %v1483_v14 }
 0x37b   :  { %1195 = vmatprep.subr.mxu0 %v1371_v0 }
 0x37c   :  { %1196 = vmatpush3.msra.mxu0 %v1490_v15 }
 0x37d   :  { %1197 = vmatprep.subr.mxu0 %v1371_v0 }
 0x37e   :  { %1198 = vmatpush3.msra.mxu0 %v1496_v16 }
 0x37f   :  { %1199 = vmatprep.subr.mxu0 %v1371_v0 }
 0x380   :  { %1200 = vmatpush3.msra.mxu0 %v1502_v17 }
 0x381   :  { %1201 = vmatprep.subr.mxu0 %v1371_v0 }
 0x382   :  { %1202 = vmatpush3.msra.mxu0 %v1508_v18 }
 0x383   :  { %1203 = vmatprep.subr.mxu0 %v1371_v0 }
 0x384   :  { %1204 = vmatpush3.msra.mxu0 %v1514_v19 }
 0x385   :  { %1243 = vmatprep.subr.mxu0 %v1371_v0 }
 0x425   :  { %v497_v53 = vpop.f32.mrf.mxu0 }
 0x426   :  { %v501_v54 = vadd.f32 %v497_v53, %v180_v52 }
 0x427   :  { %v1137_v55 = vpop.f32.mrf.mxu0 }
 0x428   :  { %1293 = vtanh.f32 %v501_v54 }
 0x435   :  { %v1294_v56 = vpop.eup %1293 }
 0x436   :  { %1171 = vmatmul.mubr.f32.vlgmr.msra.gmra.mxu1 %v1294_v56 }
 0x437   :  { %1209 = vmatpush3.msra.mxu1 %v1426_v4  ;;  %1240 = vmatprep.mubr.msk.f32.mxu1 %vm1372_vm1, %v1371_v0  ;;  %v729_v4 = vld [vmem:[#allocation5 + $0x50] sm:$0xff] }
 0x438   :  { %1210 = vmatprep.subr.mxu1 %v1371_v0 }
 0x439   :  { %1211 = vmatpush3.msra.mxu1 %v1428_v5  ;;  %v728_v5 = vld [vmem:[#allocation5 + $0x48] sm:$0xff] }
 0x43a   :  { %1212 = vmatprep.subr.mxu1 %v1371_v0 }
 0x43b   :  { %1213 = vmatpush3.msra.mxu1 %v1433_v6  ;;  %v190_v6 = vadd.f32 %v1529_v21, %v1633_v41 }
 0x43c   :  { %1214 = vmatprep.subr.mxu1 %v1371_v0 }
 0x43d   :  { %1215 = vmatpush3.msra.mxu1 %v1438_v7 }
 0x43e   :  { %1216 = vmatprep.subr.mxu1 %v1371_v0 }
 0x43f   :  { %1217 = vmatpush3.msra.mxu1 %v1444_v8 }
 0x440   :  { %1218 = vmatprep.subr.mxu1 %v1371_v0 }
 0x441   :  { %1219 = vmatpush3.msra.mxu1 %v1450_v9 }
 0x442   :  { %1220 = vmatprep.subr.mxu1 %v1371_v0 }
 0x443   :  { %1221 = vmatpush3.msra.mxu1 %v1464_v10 }
 0x444   :  { %1222 = vmatprep.subr.mxu1 %v1371_v0 }
 0x445   :  { %1223 = vmatpush3.msra.mxu1 %v1469_v11  ;;  %v727_v11 = vld [vmem:[#allocation5 + $0x40] sm:$0xff] }
 0x446   :  { %1224 = vmatprep.subr.mxu1 %v1371_v0 }
 0x447   :  { %1225 = vmatpush3.msra.mxu1 %v1475_v12  ;;  %v726_v12 = vld [vmem:[#allocation5 + $0x38] sm:$0xff] }
 0x448   :  { %1226 = vmatprep.subr.mxu1 %v1371_v0 }
 0x449   :  { %1227 = vmatpush3.msra.mxu1 %v1481_v13  ;;  %v725_v13 = vld [vmem:[#allocation5 + $0x30] sm:$0xff] }
 0x44a   :  { %1228 = vmatprep.subr.mxu1 %v1371_v0 }
 0x44b   :  { %1229 = vmatpush3.msra.mxu1 %v1483_v14  ;;  %v724_v14 = vld [vmem:[#allocation5 + $0x28] sm:$0xff] }
 0x44c   :  { %1230 = vmatprep.subr.mxu1 %v1371_v0 }
 0x44d   :  { %1231 = vmatpush3.msra.mxu1 %v1490_v15  ;;  %v723_v15 = vld [vmem:[#allocation5 + $0x20] sm:$0xff] }
 0x44e   :  { %1232 = vmatprep.subr.mxu1 %v1371_v0 }
 0x44f   :  { %1233 = vmatpush3.msra.mxu1 %v1496_v16  ;;  %v722_v16 = vld [vmem:[#allocation5 + $0x18] sm:$0xff] }
 0x450   :  { %1234 = vmatprep.subr.mxu1 %v1371_v0 }
 0x451   :  { %1235 = vmatpush3.msra.mxu1 %v1502_v17  ;;  %v721_v17 = vld [vmem:[#allocation5 + $0x10] sm:$0xff] }
 0x452   :  { %1236 = vmatprep.subr.mxu1 %v1371_v0 }
 0x453   :  { %1237 = vmatpush3.msra.mxu1 %v1508_v18  ;;  %v720_v18 = vld [vmem:[#allocation5 + $0x8] sm:$0xff] }
 0x454   :  { %1238 = vmatprep.subr.mxu1 %v1371_v0 }
 0x455   :  { %1239 = vmatpush3.msra.mxu1 %v1514_v19  ;;  %v719_v19 = vld [vmem:[#allocation5] sm:$0xff] }
 0x4f6   :  { %v569_v58 = vpop.f32.mrf.mxu1 }
 0x4f7   :  { %v573_v59 = vadd.f32 %v569_v58, %v185_v57 }
 0x4f8   :  { %v1172_v60 = vpop.f32.mrf.mxu1 }
 0x4f9   :  { %1295 = vtanh.f32 %v573_v59 }
 0x506   :  { %v1296_v61 = vpop.eup %1295 }
 0x507   :  { %1206 = vmatmul.mubr.f32.vlgmr.msra.gmra.mxu0 %v1296_v61 }
 0x508   :  { %1275 = vmatprep.mubr.msk.f32.mxu0 %vm1372_vm1, %v1371_v0  ;;  %1244 = vmatpush3.msra.mxu0 %v734_v62 }
 0x509   :  { %1245 = vmatprep.subr.mxu0 %v1371_v0 }
 0x50a   :  { %1246 = vmatpush3.msra.mxu0 %v733_v63 }
 0x50b   :  { %1247 = vmatprep.subr.mxu0 %v1371_v0 }
 0x50c   :  { %1248 = vmatpush3.msra.mxu0 %v732_v1 }
 0x50d   :  { %1249 = vmatprep.subr.mxu0 %v1371_v0 }
 0x50e   :  { %1250 = vmatpush3.msra.mxu0 %v731_v2 }
 0x50f   :  { %1251 = vmatprep.subr.mxu0 %v1371_v0 }
 0x510   :  { %1252 = vmatpush3.msra.mxu0 %v730_v3 }
 0x511   :  { %1253 = vmatprep.subr.mxu0 %v1371_v0 }
 0x512   :  { %1254 = vmatpush3.msra.mxu0 %v729_v4 }
 0x513   :  { %1255 = vmatprep.subr.mxu0 %v1371_v0 }
 0x514   :  { %1256 = vmatpush3.msra.mxu0 %v728_v5 }
 0x515   :  { %1257 = vmatprep.subr.mxu0 %v1371_v0 }
 0x516   :  { %1258 = vmatpush3.msra.mxu0 %v727_v11 }
 0x517   :  { %1259 = vmatprep.subr.mxu0 %v1371_v0 }
 0x518   :  { %1260 = vmatpush3.msra.mxu0 %v726_v12 }
 0x519   :  { %1261 = vmatprep.subr.mxu0 %v1371_v0 }
 0x51a   :  { %1262 = vmatpush3.msra.mxu0 %v725_v13 }
 0x51b   :  { %1263 = vmatprep.subr.mxu0 %v1371_v0 }
 0x51c   :  { %1264 = vmatpush3.msra.mxu0 %v724_v14 }
 0x51d   :  { %1265 = vmatprep.subr.mxu0 %v1371_v0 }
 0x51e   :  { %1266 = vmatpush3.msra.mxu0 %v723_v15 }
 0x51f   :  { %1267 = vmatprep.subr.mxu0 %v1371_v0 }
 0x520   :  { %1268 = vmatpush3.msra.mxu0 %v722_v16 }
 0x521   :  { %1269 = vmatprep.subr.mxu0 %v1371_v0 }
 0x522   :  { %1270 = vmatpush3.msra.mxu0 %v721_v17 }
 0x523   :  { %1271 = vmatprep.subr.mxu0 %v1371_v0 }
 0x524   :  { %1272 = vmatpush3.msra.mxu0 %v720_v18 }
 0x525   :  { %1273 = vmatprep.subr.mxu0 %v1371_v0 }
 0x526   :  { %1274 = vmatpush3.msra.mxu0 %v719_v19 }
 0x5c7   :  { %v641_v7 = vpop.f32.mrf.mxu0 }
 0x5c8   :  { %v645_v8 = vadd.f32 %v641_v7, %v190_v6 }
 0x5c9   :  { %v1207_v9 = vpop.f32.mrf.mxu0 }
 0x5ca   :  { %1297 = vtanh.f32 %v645_v8 }
 0x5d7   :  { %v1298_v10 = vpop.eup %1297 }
 0x5d8   :  { %1241 = vmatmul.mubr.f32.vlgmr.msra.gmra.mxu1 %v1298_v10 }
 0x698   :  { %v713_v22 = vpop.f32.mrf.mxu1 }
 0x699   :  { %v717_v23 = vadd.f32 %v713_v22, %v195_v20 }
 0x69a   :  { %v1242_v24 = vpop.f32.mrf.mxu1 }
 0x69b   :  { %1299 = vtanh.f32 %v717_v23 }
 0x6a8   :  { %v1300_v25 = vpop.eup %1299 }
 0x6a9   :  { %1276 = vmatmul.mubr.f32.vlgmr.msra.gmra.mxu0 %v1300_v25 }
 0x769   :  { %v808_v27 = vpop.f32.mrf.mxu0 }
 0x76a   :  { %v809_v28 = vadd.f32 %v838_v26, %v808_v27 }
 0x76b   :  { %v1277_v0 = vpop.f32.mrf.mxu0 }
 0x76c   :  { %812 = vst [vmem:[#allocation7] sm:$0xff] %v809_v28 }
 0x76d   :  { %1352 = shalt.err (!%p1349_p0)
}
 0x76e   :  { %822 = dma.vmem_to_hbm [thread:$0]  %s820_s27, 128, %s1775_s6, [#allocation4]  }
 0x76f   :  { %1365 = dma.done.wait [#allocation4], 128  }
 0x770   :  { %1366 = vsyncadd [#allocation4], 4294967168 }
 0x771   :  { %826 = vsyncpa [#allocation3], 1 }
 0x772   :  { %827 = vsyncpa [#allocation6], 1 }
 0x773   :  { %828 = vsyncpa [#allocation4], 1 }

</bundles_post_ra>
